<compile_context>
chip_gen: v5e
topology: v5e:2x2
jax: 0.10.0
libtpu: 0.0.40
codegen_flags: <defaults>
</compile_context>

<pallas_src>
import functools

import jax
import jax.numpy as jnp
from jax.experimental import pallas as pl
from jax.experimental.pallas import tpu as pltpu


_TARGET_TILE_BYTES = 4 * 1024 * 1024   # ~4 MiB/tile; in+out double-buffered ~16 MiB
_SMALL_FALLBACK_BYTES = 64 * 1024      # below this, launch cost > DMA cost


def _activation_kernel(x_ref, o_ref, *, activation_type, compute_dtype):
    x = x_ref[...].astype(compute_dtype)

    if activation_type == "relu":
        y = jnp.maximum(x, 0)
    elif activation_type == "leakyrelu":
        y = jnp.where(x >= 0, x, x * 0.01)
    elif activation_type == "gelu_new":
        # tanh approximation of GELU ("gelu_new" in adapter libs / BERT)
        c = 0.7978845608028654  # sqrt(2/pi)
        y = 0.5 * x * (1.0 + jnp.tanh(c * (x + 0.044715 * (x * x * x))))
    elif activation_type in ("gelu", "gelu_orig"):
        # exact (erf-based) GELU
        # TODO(synk): erf lowers to a VALU polynomial; on v7x prefer a
        # tanh/exp-based erf approximation if model-acceptable.
        y = 0.5 * x * (1.0 + jax.lax.erf(x * 0.7071067811865476))
    elif activation_type in ("swish", "silu"):
        # exact sigmoid via tanh: one EUP op, no approx reciprocal error
        y = x * (0.5 * (jnp.tanh(0.5 * x) + 1.0))
    elif activation_type == "tanh":
        y = jnp.tanh(x)
    else:
        raise ValueError(f"unsupported activation_type: {activation_type}")

    o_ref[...] = y.astype(o_ref.dtype)


# Plain-jnp versions used for the tiny-input fallback (XLA fuses these).
_ACT_FALLBACK = {
    "relu": lambda x: jnp.maximum(x, 0),
    "leakyrelu": lambda x: jnp.where(x >= 0, x, x * 0.01).astype(x.dtype),
    "gelu_new": lambda x: jax.nn.gelu(x, approximate=True),
    "gelu": lambda x: jax.nn.gelu(x, approximate=False),
    "gelu_orig": lambda x: jax.nn.gelu(x, approximate=False),
    "swish": jax.nn.silu,
    "silu": jax.nn.silu,
    "tanh": jnp.tanh,
}


def _round_up8(n):
    return ((n + 7) // 8) * 8


def _pick_row_block(rows, lane, itemsize):
    """Row-block size: ~_TARGET_TILE_BYTES tiles, /8-aligned, even >=4 steps."""
    if rows <= 8:
        return rows  # single full block (block dim == full array dim is legal)

    target_rows = max(1, _TARGET_TILE_BYTES // (lane * itemsize))
    br = max(8, (min(target_rows, rows) // 8) * 8)
    if br > rows:
        br = rows
    nb = pl.cdiv(rows, br)

    # Prefer >=4 (and even) grid steps when there is enough data: balances
    # v7x's 2 TensorCores and keeps intra-core prefetch/writeback overlap.
    min_steps = 4 if rows >= 32 else (2 if rows >= 16 else 1)
    if nb < min_steps:
        br = max(8, _round_up8(pl.cdiv(rows, min_steps)))
        nb = pl.cdiv(rows, br)
    if nb > 1 and nb % 2 == 1:
        br2 = max(8, _round_up8(pl.cdiv(rows, nb + 1)))
        if pl.cdiv(rows, br2) % 2 == 0:
            br = br2
    return br


def activations_forward(x, activation_type="gelu_new"):
    """Applies the chosen activation elementwise, preserving shape & dtype."""
    if activation_type not in _ACT_FALLBACK:
        raise ValueError(f"unsupported activation_type: {activation_type}")

    total = x.size
    itemsize = jnp.dtype(x.dtype).itemsize
    if total == 0 or x.ndim == 0 or total * itemsize < _SMALL_FALLBACK_BYTES:
        # Tiny adapter-sized tensors: let XLA fuse; no Pallas launch overhead.
        return _ACT_FALLBACK[activation_type](x)

    orig_shape = x.shape
    D = x.shape[-1]
    # Leading-dims-only collapse: no relayout copy (last dim untouched).
    x2 = x.reshape(-1, D)
    rows = x2.shape[0]

    br = _pick_row_block(rows, D, itemsize)
    grid = (pl.cdiv(rows, br),)

    # Pure-VALU activations run in the native dtype (bf16-friendly);
    # transcendental ones compute in f32 for cross-generation safety.
    if activation_type in ("relu", "leakyrelu"):
        compute_dtype = x.dtype
    else:
        compute_dtype = jnp.float32

    out2 = pl.pallas_call(
        functools.partial(
            _activation_kernel,
            activation_type=activation_type,
            compute_dtype=compute_dtype,
        ),
        out_shape=jax.ShapeDtypeStruct((rows, D), x.dtype),
        grid=grid,
        in_specs=[pl.BlockSpec((br, D), lambda i: (i, 0))],
        out_specs=pl.BlockSpec((br, D), lambda i: (i, 0)),
        compiler_params=pltpu.CompilerParams(
            dimension_semantics=("parallel",),
            vmem_limit_bytes=32 * 1024 * 1024,
        ),
    )(x2)

    return out2.reshape(orig_shape)


if __name__ == "__main__":
    key = jax.random.PRNGKey(0)
    k1, k2, k3, k4, k5 = jax.random.split(key, 5)

    # 1) gelu_new, tiny adapter-bottleneck shape -> small-tensor fallback path.
    x1 = jax.random.normal(k1, (2, 8, 32), dtype=jnp.float32)
    y1 = jax.block_until_ready(activations_forward(x1, "gelu_new"))
    ref1 = jax.nn.gelu(x1, approximate=True)
    assert y1.shape == x1.shape and y1.dtype == x1.dtype
    assert jnp.allclose(y1, ref1, atol=1e-5, rtol=1e-5), "gelu_new (small) mismatch"

    # 2) swish, hidden dim 96 (not a multiple of 128) -> Pallas path with the
    #    full-last-dim lane block + multi-step grid + exact tanh-sigmoid.
    x2 = jax.random.normal(k2, (4, 128, 96), dtype=jnp.float32)
    y2 = jax.block_until_ready(activations_forward(x2, "swish"))
    ref2 = jax.nn.silu(x2)
    assert y2.shape == x2.shape and y2.dtype == x2.dtype
    assert jnp.allclose(y2, ref2, atol=1e-4, rtol=1e-4), "swish mismatch"

    # 3) relu, bf16, tiny -> fallback; exercises native-dtype (no upcast).
    x3 = jax.random.normal(k3, (2, 16, 64), dtype=jnp.bfloat16)
    y3 = jax.block_until_ready(activations_forward(x3, "relu"))
    ref3 = jnp.maximum(x3, 0)
    assert y3.shape == x3.shape and y3.dtype == x3.dtype
    assert jnp.allclose(y3.astype(jnp.float32), ref3.astype(jnp.float32)), "relu mismatch"

    # 4) gelu_new, f32, last dim a multiple of 128 -> Pallas path, unmasked
    #    lane-dense stores, 4-step parallel grid.
    x4 = jax.random.normal(k4, (2, 256, 256), dtype=jnp.float32)
    y4 = jax.block_until_ready(activations_forward(x4, "gelu_new"))
    ref4 = jax.nn.gelu(x4, approximate=True)
    assert y4.shape == x4.shape and y4.dtype == x4.dtype
    assert jnp.allclose(y4, ref4, atol=1e-5, rtol=1e-5), "gelu_new (pallas) mismatch"

    # 5) tanh, bf16 -> Pallas path, f32 in-register compute, bf16 traffic.
    x5 = jax.random.normal(k5, (4, 128, 128), dtype=jnp.bfloat16)
    y5 = jax.block_until_ready(activations_forward(x5, "tanh"))
    ref5 = jnp.tanh(x5)
    assert y5.shape == x5.shape and y5.dtype == x5.dtype
    assert jnp.allclose(
        y5.astype(jnp.float32), ref5.astype(jnp.float32), atol=2e-2, rtol=2e-2
    ), "tanh mismatch"

    print("KERNEL_OK")
</pallas_src>

<mosaic_0001>
module attributes {stable_mosaic.version = 11 : i64} {
  func.func @_activation_kernel(%arg0: i32, %arg1: memref<128x96xf32, #tpu.memory_space<vmem>>, %arg2: memref<128x96xf32, #tpu.memory_space<vmem>>) attributes {dimension_semantics = [#tpu.dimension_semantics<parallel>], iteration_bounds = array<i64: 4>, scalar_prefetch = 0 : i64, scratch_operands = 0 : i64, tpu.core_type = #tpu.core_type<tc>, window_params = [{transform_indices = @transform_0, window_bounds = array<i64: 128, 96>}, {transform_indices = @transform_1, window_bounds = array<i64: 128, 96>}]} {
    %c0 = arith.constant 0 : index
    %c0_0 = arith.constant 0 : index
    %0 = vector.load %arg1[%c0, %c0_0] : memref<128x96xf32, #tpu.memory_space<vmem>>, vector<128x96xf32>
    %cst = arith.constant 5.000000e-01 : f32
    %1 = vector.broadcast %cst : f32 to vector<128x96xf32>
    %2 = arith.mulf %1, %0 : vector<128x96xf32>
    %3 = math.tanh %2 : vector<128x96xf32>
    %cst_1 = arith.constant 1.000000e+00 : f32
    %4 = vector.broadcast %cst_1 : f32 to vector<128x96xf32>
    %5 = arith.addf %3, %4 : vector<128x96xf32>
    %cst_2 = arith.constant 5.000000e-01 : f32
    %6 = vector.broadcast %cst_2 : f32 to vector<128x96xf32>
    %7 = arith.mulf %6, %5 : vector<128x96xf32>
    %8 = arith.mulf %0, %7 : vector<128x96xf32>
    %c0_3 = arith.constant 0 : index
    %c0_4 = arith.constant 0 : index
    %9 = vector.load %arg2[%c0_3, %c0_4] : memref<128x96xf32, #tpu.memory_space<vmem>>, vector<128x96xf32>
    tpu.vector_store %arg2[%c0_3, %c0_4], %8 {strides = array<i32>} : memref<128x96xf32, #tpu.memory_space<vmem>>, vector<128x96xf32>,
    return
  }
  func.func @transform_0(%arg0: i32) -> (i32, i32) {
    %c0_i32 = arith.constant 0 : i32
    %c0_i32_0 = arith.constant 0 : i32
    return %arg0, %c0_i32 : i32, i32
  }
  func.func @transform_1(%arg0: i32) -> (i32, i32) {
    %c0_i32 = arith.constant 0 : i32
    %c0_i32_0 = arith.constant 0 : i32
    return %arg0, %c0_i32 : i32, i32
  }
}

</mosaic_0001>

<bundles_post_ra>
// kernel: tpu_custom_call.1
= control target key start
LH: loop header
LB: loop body
LE: loop exit
PB: predicated region body
PF: predicated region fallthrough
CT: control target
= control target key end

     0   :  { %s358_s6 = smov 0   ;;  %s490_s0 = inlined_call_operand.vmem [shape: f32[512,96], index: 0, kind: input, shape index: {}]   ;;  %s491_s1 = inlined_call_operand.vmem [shape: f32[512,96], index: 1, kind: output, shape index: {}]  }
   0x1 LB: > { %s289_s7 = sadd.s32 4294967295, %s346_s6   ;;  %p293_p0 = scmp.ge.s32.totalorder %s346_s6, 1  ;;  %s346_s6 = sphi %s358_s6, %s11_s6  }
   0x2   : > { %p88_p1 = scmp.lt.s32.totalorder %s346_s6, 5 }
   0x4   : > { %p89_p2 = pnand %p293_p0, %p88_p1 }
   0x5   : > { %s294_s8 = sshll.u32 (!%p89_p2), %s289_s7, 4 }
   0x6   : > { %92 = sbr.rel (%p89_p2) target bundleno = 46 (0x2e), region = 24  ;;  %p109_p3 = scmp.lt.s32.totalorder (!%p89_p2), %s294_s8, 63 }
   0xb   : > { %s493_s8 = smov (!%p109_p3, %s294_s8), 63  ;;  %vm216_vm0 = vcmask 785408  }
   0xc   : > { %s295_s9 = sshll.u32 %s493_s8, 3 }
   0xd   : > { %s374_s12 = scalar_lea.vmem %s490_s0, %s295_s9  ;;  %s438_s15 = scalar_lea.vmem %s491_s1, %s295_s9 }
   0xe   : > { %v120_v0 = vld [vmem:[%s374_s12] sm:$0xff]  ;;  %v121_v1 = vld [vmem:[%s374_s12 + $0x8] sm:$0xff]  ;;  %v379_v2 = vld [vmem:[%s374_s12 + $0x10] sm:$0xff] }
   0xf   : > { %v136_v3 = vmul.f32 0.5, %v120_v0  ;;  %v137_v4 = vmul.f32 0.5, %v121_v1  ;;  %v138_v5 = vmul.f32 0.5, %v379_v2  ;;  %v383_v6 = vld [vmem:[%s374_s12 + $0x18] sm:$0xff]  ;;  %v386_v7 = vld [vmem:[%s374_s12 + $0x20] sm:$0xff]  ;;  %v389_v8 = vld [vmem:[%s374_s12 + $0x28] sm:$0xff] }
  0x10   : > { %v139_v9 = vmul.f32 0.5, %v383_v6  ;;  %v393_v10 = vld [vmem:[%s374_s12 + $0x30] sm:$0xff]  ;;  %v140_v11 = vmul.f32 0.5, %v386_v7  ;;  %v397_v12 = vld [vmem:[%s374_s12 + $0x38] sm:$0xff]  ;;  %v141_v13 = vmul.f32 0.5, %v389_v8  ;;  %v401_v14 = vld [vmem:[%s374_s12 + $0x40] sm:$0xff] }
  0x11   : > { %308 = vtanh.f32 %v136_v3  ;;  %v142_v15 = vmul.f32 0.5, %v393_v10  ;;  %v405_v16 = vld [vmem:[%s374_s12 + $0x48] sm:$0xff]  ;;  %v143_v17 = vmul.f32 0.5, %v397_v12  ;;  %v409_v18 = vld [vmem:[%s374_s12 + $0x50] sm:$0xff]  ;;  %v144_v19 = vmul.f32 0.5, %v401_v14  ;;  %v413_v20 = vld [vmem:[%s374_s12 + $0x58] sm:$0xff] }
  0x12   : > { %310 = vtanh.f32 %v137_v4  ;;  %v145_v21 = vmul.f32 0.5, %v405_v16  ;;  %v417_v22 = vld [vmem:[%s374_s12 + $0x60] sm:$0xff]  ;;  %v420_v23 = vld [vmem:[%s374_s12 + $0x68] sm:$0xff]  ;;  %v146_v25 = vmul.f32 0.5, %v409_v18  ;;  %v424_v26 = vld [vmem:[%s374_s12 + $0x70] sm:$0xff]  ;;  %v147_v29 = vmul.f32 0.5, %v413_v20 }
  0x13   : > { %312 = vtanh.f32 %v138_v5  ;;  %v428_v30 = vld [vmem:[%s374_s12 + $0x78] sm:$0xff]  ;;  %v148_v33 = vmul.f32 0.5, %v417_v22  ;;  %v149_v34 = vmul.f32 0.5, %v420_v23  ;;  %v150_v38 = vmul.f32 0.5, %v424_v26 }
  0x14   : > { %314 = vtanh.f32 %v139_v9  ;;  %v151_v42 = vmul.f32 0.5, %v428_v30 }
  0x15   : > { %316 = vtanh.f32 %v140_v11 }
  0x16   : > { %318 = vtanh.f32 %v141_v13 }
  0x17   : > { %v309_v24 = vpop.eup %308  ;;  %320 = vtanh.f32 %v142_v15 }
  0x18   : > { %v311_v27 = vpop.eup %310  ;;  %v168_v28 = vadd.f32 1.0, %v309_v24  ;;  %322 = vtanh.f32 %v143_v17 }
  0x19   : > { %v313_v31 = vpop.eup %312  ;;  %v169_v32 = vadd.f32 1.0, %v311_v27  ;;  %324 = vtanh.f32 %v144_v19 }
  0x1a   : > { %v315_v35 = vpop.eup %314  ;;  %v184_v36 = vmul.f32 0.5, %v168_v28  ;;  %v170_v37 = vadd.f32 1.0, %v313_v31  ;;  %326 = vtanh.f32 %v145_v21 }
  0x1b   : > { %v317_v39 = vpop.eup %316  ;;  %v185_v40 = vmul.f32 0.5, %v169_v32  ;;  %v171_v41 = vadd.f32 1.0, %v315_v35  ;;  %328 = vtanh.f32 %v146_v25 }
  0x1c   : > { %v319_v43 = vpop.eup %318  ;;  %v200_v44 = vmul.f32 %v184_v36, %v120_v0  ;;  %v186_v45 = vmul.f32 0.5, %v170_v37  ;;  %v172_v46 = vadd.f32 1.0, %v317_v39  ;;  %330 = vtanh.f32 %v147_v29 }
  0x1d   : > { %v321_v47 = vpop.eup %320  ;;  %v201_v48 = vmul.f32 %v185_v40, %v121_v1  ;;  %v187_v49 = vmul.f32 0.5, %v171_v41  ;;  %v173_v50 = vadd.f32 1.0, %v319_v43  ;;  %332 = vtanh.f32 %v148_v33 }
  0x1e   : > { %v323_v51 = vpop.eup %322  ;;  %217 = vst.msk [vmem:[%s438_s15] sm:$0xff] %vm216_vm0, %v200_v44  ;;  %v202_v52 = vmul.f32 %v186_v45, %v379_v2  ;;  %v188_v53 = vmul.f32 0.5, %v172_v46  ;;  %v174_v54 = vadd.f32 1.0, %v321_v47  ;;  %334 = vtanh.f32 %v149_v34 }
  0x1f   : > { %v325_v55 = vpop.eup %324  ;;  %218 = vst.msk [vmem:[%s438_s15 + $0x8] sm:$0xff] %vm216_vm0, %v201_v48  ;;  %v203_v56 = vmul.f32 %v187_v49, %v383_v6  ;;  %v189_v57 = vmul.f32 0.5, %v173_v50  ;;  %v175_v58 = vadd.f32 1.0, %v323_v51  ;;  %336 = vtanh.f32 %v150_v38 }
  0x20   : > { %v327_v59 = vpop.eup %326  ;;  %219 = vst.msk [vmem:[%s438_s15 + $0x10] sm:$0xff] %vm216_vm0, %v202_v52  ;;  %v204_v60 = vmul.f32 %v188_v53, %v386_v7  ;;  %v190_v61 = vmul.f32 0.5, %v174_v54  ;;  %v176_v62 = vadd.f32 1.0, %v325_v55  ;;  %338 = vtanh.f32 %v151_v42 }
  0x21   : > { %v329_v63 = vpop.eup %328  ;;  %220 = vst.msk [vmem:[%s438_s15 + $0x18] sm:$0xff] %vm216_vm0, %v203_v56  ;;  %v205_v0 = vmul.f32 %v189_v57, %v389_v8  ;;  %v191_v1 = vmul.f32 0.5, %v175_v58  ;;  %v177_v2 = vadd.f32 1.0, %v327_v59 }
  0x22   : > { %v331_v3 = vpop.eup %330  ;;  %221 = vst.msk [vmem:[%s438_s15 + $0x20] sm:$0xff] %vm216_vm0, %v204_v60  ;;  %v206_v4 = vmul.f32 %v190_v61, %v393_v10  ;;  %v192_v5 = vmul.f32 0.5, %v176_v62  ;;  %v178_v6 = vadd.f32 1.0, %v329_v63 }
  0x23   : > { %v333_v7 = vpop.eup %332  ;;  %222 = vst.msk [vmem:[%s438_s15 + $0x28] sm:$0xff] %vm216_vm0, %v205_v0  ;;  %v207_v9 = vmul.f32 %v191_v1, %v397_v12  ;;  %v193_v11 = vmul.f32 0.5, %v177_v2  ;;  %v179_v13 = vadd.f32 1.0, %v331_v3 }
  0x24   : > { %v335_v8 = vpop.eup %334  ;;  %223 = vst.msk [vmem:[%s438_s15 + $0x30] sm:$0xff] %vm216_vm0, %v206_v4  ;;  %v208_v15 = vmul.f32 %v192_v5, %v401_v14  ;;  %v194_v17 = vmul.f32 0.5, %v178_v6  ;;  %v180_v19 = vadd.f32 1.0, %v333_v7 }
  0x25   : > { %v337_v10 = vpop.eup %336  ;;  %224 = vst.msk [vmem:[%s438_s15 + $0x38] sm:$0xff] %vm216_vm0, %v207_v9  ;;  %v209_v21 = vmul.f32 %v193_v11, %v405_v16  ;;  %v195_v24 = vmul.f32 0.5, %v179_v13  ;;  %v181_v25 = vadd.f32 1.0, %v335_v8 }
  0x26   : > { %v339_v12 = vpop.eup %338  ;;  %225 = vst.msk [vmem:[%s438_s15 + $0x40] sm:$0xff] %vm216_vm0, %v208_v15  ;;  %v210_v27 = vmul.f32 %v194_v17, %v409_v18  ;;  %v196_v28 = vmul.f32 0.5, %v180_v19  ;;  %v182_v14 = vadd.f32 1.0, %v337_v10 }
  0x27   : > { %226 = vst.msk [vmem:[%s438_s15 + $0x48] sm:$0xff] %vm216_vm0, %v209_v21  ;;  %v211_v29 = vmul.f32 %v195_v24, %v413_v20  ;;  %v197_v31 = vmul.f32 0.5, %v181_v25  ;;  %v183_v32 = vadd.f32 1.0, %v339_v12 }
  0x28   : > { %227 = vst.msk [vmem:[%s438_s15 + $0x50] sm:$0xff] %vm216_vm0, %v210_v27  ;;  %v212_v16 = vmul.f32 %v196_v28, %v417_v22  ;;  %v198_v33 = vmul.f32 0.5, %v182_v14 }
  0x29   : > { %228 = vst.msk [vmem:[%s438_s15 + $0x58] sm:$0xff] %vm216_vm0, %v211_v29  ;;  %v213_v34 = vmul.f32 %v197_v31, %v420_v23  ;;  %v199_v18 = vmul.f32 0.5, %v183_v32 }
  0x2a   : > { %229 = vst.msk [vmem:[%s438_s15 + $0x60] sm:$0xff] %vm216_vm0, %v212_v16  ;;  %v214_v35 = vmul.f32 %v198_v33, %v424_v26 }
  0x2b   : > { %230 = vst.msk [vmem:[%s438_s15 + $0x68] sm:$0xff] %vm216_vm0, %v213_v34  ;;  %v215_v20 = vmul.f32 %v199_v18, %v428_v30 }
  0x2c   : > { %231 = vst.msk [vmem:[%s438_s15 + $0x70] sm:$0xff] %vm216_vm0, %v214_v35 }
  0x2d   : > { %232 = vst.msk [vmem:[%s438_s15 + $0x78] sm:$0xff] %vm216_vm0, %v215_v20 }
  0x2e PF: > { %s11_s6 = sadd.s32 1, %s346_s6  }
  0x2f   : > { %p8_p4 = scmp.ge.s32.totalorder %s11_s6, 6  }
  0x31   :  { %10 = sbr.rel (!%p8_p4) target bundleno = 1 (0x1), region = 54 }

</bundles_post_ra>
